<compile_context>
chip_gen: v5e
topology: v5e:2x2
jax: 0.10.0
libtpu: 0.0.40
codegen_flags: <defaults>
</compile_context>

<pallas_src>
import functools

import jax
import jax.numpy as jnp
from jax.experimental import pallas as pl
from jax.experimental.pallas import tpu as pltpu

PAD = 128  # lane width all hidden/output features are padded to


def _round_up(n, m):
    return (n + m - 1) // m * m


def _ppo_forward_kernel(layer_rows, x_ref, params_ref, out_ref):
    """Fused MLP: (Linear+ReLU)*n_share -> fused [critic|actor] head.

    layer_rows: static tuple, contraction width (weight rows) per layer; the
                last entry is the fused head. Packed-buffer layout per layer:
                  [round_up(rows, 8) rows of weight | 8 rows, bias in row 0]
    """
    h = x_ref[...]
    n = len(layer_rows)
    off = 0
    for li, rows in enumerate(layer_rows):
        w_store = _round_up(rows, 8)
        w = params_ref[off:off + rows, :]                    # (rows, PAD)
        b = params_ref[off + w_store:off + w_store + 1, :]   # (1, PAD)
        off += w_store + 8
        h = jnp.dot(h, w, preferred_element_type=jnp.float32) + b
        if li < n - 1:  # share layers get ReLU; fused head does not
            h = jnp.maximum(h, 0.0)
    out_ref[...] = h  # lane-dense (B, PAD) store


def prep_params(share_params, critic_params, actor_params):
    """One-time parameter packing.

    Returns (packed_params, meta):
      packed_params: (total_rows, PAD) float32, all layers concatenated.
      meta:          (layer_rows tuple, num_products) — static.
    Head fusion: W_head = [wc | wa] -> col 0 is value, cols 1.. are score.
    """
    wc, bc = critic_params
    wa, ba = actor_params
    wh = jnp.concatenate([wc, wa], axis=1)   # (nn_out, 1 + num_products)
    bh = jnp.concatenate([bc, ba], axis=0)   # (1 + num_products,)
    layers = list(share_params) + [(wh, bh)]

    blocks = []
    layer_rows = []
    for li, (w, b) in enumerate(layers):
        in_dim, out_dim = w.shape
        # Contraction width the kernel will use: real input width for the
        # first layer (x is not padded), PAD for everything downstream
        # (activations are lane-padded to PAD with exact zeros).
        rows = in_dim if li == 0 else PAD
        w_pad = jnp.zeros((_round_up(rows, 8), PAD), jnp.float32)
        w_pad = w_pad.at[:in_dim, :out_dim].set(w.astype(jnp.float32))
        b_pad = jnp.zeros((8, PAD), jnp.float32)
        b_pad = b_pad.at[0, :out_dim].set(b.astype(jnp.float32))
        blocks += [w_pad, b_pad]
        layer_rows.append(rows)

    packed = jnp.concatenate(blocks, axis=0)
    num_products = actor_params[0].shape[1]
    return packed, (tuple(layer_rows), num_products)


@functools.partial(jax.jit, static_argnums=(2,))
def ppo_forward(x, packed_params, meta):
    """Run the fused PPO forward. Returns (score, value) like the PyTorch module."""
    layer_rows, num_products = meta
    batch = x.shape[0]
    vmem = pl.BlockSpec(memory_space=pltpu.MemorySpace.VMEM)
    out = pl.pallas_call(
        functools.partial(_ppo_forward_kernel, layer_rows),
        out_shape=jax.ShapeDtypeStruct((batch, PAD), jnp.float32),
        in_specs=[vmem, vmem],
        out_specs=vmem,
    )(x, packed_params)
    value = out[:, 0:1]                     # critic head (col 0)
    score = out[:, 1:1 + num_products]      # actor head  (cols 1..num_products)
    return score, value


def _linear_init(key, fan_in, fan_out):
    """PyTorch nn.Linear default init: U(-1/sqrt(fan_in), 1/sqrt(fan_in)).

    Weight is returned already transposed to (in, out)."""
    kw, kb = jax.random.split(key)
    bound = 1.0 / (fan_in ** 0.5)
    w = jax.random.uniform(kw, (fan_in, fan_out), jnp.float32, -bound, bound)
    b = jax.random.uniform(kb, (fan_out,), jnp.float32, -bound, bound)
    return w, b


def _reference_forward(x, share_params, critic_params, actor_params):
    h = x
    for w, b in share_params:
        h = jnp.maximum(h @ w + b, 0.0)
    value = h @ critic_params[0] + critic_params[1]
    score = h @ actor_params[0] + actor_params[1]
    return score, value


if __name__ == "__main__":
    # Small, deterministic configuration consistent with the module's __init__:
    #   num_products=4, cus_embedding_dim=4, t_embedding_dim=4 -> D_in = 12
    #   args.h=2, args.w=[32, 32], args.nn_out=32, MLP=True
    batch = 2
    num_products = 4
    cus_embedding_dim = 4
    t_embedding_dim = 4
    d_in = num_products + cus_embedding_dim + t_embedding_dim  # 12
    w_cfg = [32, 32]
    nn_out = 32

    # share layer dims: Linear(12,32) -> Linear(32,32) -> Linear(32,32), each + ReLU
    share_dims = [d_in] + w_cfg + [nn_out]

    key = jax.random.PRNGKey(0)
    keys = jax.random.split(key, len(share_dims) + 2)

    share_params = []
    for li in range(len(share_dims) - 1):
        share_params.append(
            _linear_init(keys[li], share_dims[li], share_dims[li + 1])
        )
    critic_params = _linear_init(keys[-3], nn_out, 1)
    actor_params = _linear_init(keys[-2], nn_out, num_products)

    x = jax.random.uniform(keys[-1], (batch, d_in), jnp.float32)

    # One-time parameter packing (hoisted out of the per-call path).
    packed_params, meta = prep_params(share_params, critic_params, actor_params)

    score, value = ppo_forward(x, packed_params, meta)
    jax.block_until_ready((score, value))

    # Sanity check vs. pure-JAX reference of the same math.
    score_ref, value_ref = _reference_forward(
        x, share_params, critic_params, actor_params
    )
    assert score.shape == (batch, num_products)
    assert value.shape == (batch, 1)
    assert jnp.allclose(score, score_ref, atol=1e-5, rtol=1e-5)
    assert jnp.allclose(value, value_ref, atol=1e-5, rtol=1e-5)

    # TODO(synk): MLP=False branch (nn.RNN actor + sequential masked sampling in
    # _select_node_RNN) is data-dependent control flow outside forward()'s hot
    # path and is not implemented here.
    print("KERNEL_OK")
</pallas_src>

<mosaic_0001>
module attributes {stable_mosaic.version = 11 : i64} {
  func.func @_ppo_forward_kernel(%arg0: memref<2x12xf32, #tpu.memory_space<vmem>>, %arg1: memref<432x128xf32, #tpu.memory_space<vmem>>, %arg2: memref<2x128xf32, #tpu.memory_space<vmem>>) attributes {dimension_semantics = [], scalar_prefetch = 0 : i64, scratch_operands = 0 : i64, tpu.core_type = #tpu.core_type<tc>} {
    %c0 = arith.constant 0 : index
    %c0_0 = arith.constant 0 : index
    %0 = vector.load %arg0[%c0, %c0_0] : memref<2x12xf32, #tpu.memory_space<vmem>>, vector<2x12xf32>
    %c0_1 = arith.constant 0 : index
    %c0_2 = arith.constant 0 : index
    %1 = vector.load %arg1[%c0_1, %c0_2] : memref<432x128xf32, #tpu.memory_space<vmem>>, vector<12x128xf32>
    %c16 = arith.constant 16 : index
    %c0_3 = arith.constant 0 : index
    %2 = vector.load %arg1[%c16, %c0_3] : memref<432x128xf32, #tpu.memory_space<vmem>>, vector<1x128xf32>
    %cst = arith.constant dense<0.000000e+00> : vector<2x128xf32>
    %3 = tpu.matmul %0, %1, %cst {dimension_numbers = #tpu.dot_dimension_numbers<[1], [0], [0], [1], [0, 0, 1, 1], [], []>} : vector<2x12xf32>, vector<12x128xf32>, vector<2x128xf32> -> vector<2x128xf32>
    %4 = vector.broadcast %2 : vector<1x128xf32> to vector<2x128xf32>
    %5 = arith.addf %3, %4 : vector<2x128xf32>
    %cst_4 = arith.constant 0.000000e+00 : f32
    %6 = vector.broadcast %cst_4 : f32 to vector<2x128xf32>
    %7 = arith.maximumf %5, %6 : vector<2x128xf32>
    %c24 = arith.constant 24 : index
    %c0_5 = arith.constant 0 : index
    %8 = vector.load %arg1[%c24, %c0_5] : memref<432x128xf32, #tpu.memory_space<vmem>>, vector<128x128xf32>
    %c152 = arith.constant 152 : index
    %c0_6 = arith.constant 0 : index
    %9 = vector.load %arg1[%c152, %c0_6] : memref<432x128xf32, #tpu.memory_space<vmem>>, vector<1x128xf32>
    %cst_7 = arith.constant dense<0.000000e+00> : vector<2x128xf32>
    %10 = tpu.matmul %7, %8, %cst_7 {dimension_numbers = #tpu.dot_dimension_numbers<[1], [0], [0], [1], [0, 0, 1, 1], [], []>} : vector<2x128xf32>, vector<128x128xf32>, vector<2x128xf32> -> vector<2x128xf32>
    %11 = vector.broadcast %9 : vector<1x128xf32> to vector<2x128xf32>
    %12 = arith.addf %10, %11 : vector<2x128xf32>
    %cst_8 = arith.constant 0.000000e+00 : f32
    %13 = vector.broadcast %cst_8 : f32 to vector<2x128xf32>
    %14 = arith.maximumf %12, %13 : vector<2x128xf32>
    %c160 = arith.constant 160 : index
    %c0_9 = arith.constant 0 : index
    %15 = vector.load %arg1[%c160, %c0_9] : memref<432x128xf32, #tpu.memory_space<vmem>>, vector<128x128xf32>
    %c288 = arith.constant 288 : index
    %c0_10 = arith.constant 0 : index
    %16 = vector.load %arg1[%c288, %c0_10] : memref<432x128xf32, #tpu.memory_space<vmem>>, vector<1x128xf32>
    %cst_11 = arith.constant dense<0.000000e+00> : vector<2x128xf32>
    %17 = tpu.matmul %14, %15, %cst_11 {dimension_numbers = #tpu.dot_dimension_numbers<[1], [0], [0], [1], [0, 0, 1, 1], [], []>} : vector<2x128xf32>, vector<128x128xf32>, vector<2x128xf32> -> vector<2x128xf32>
    %18 = vector.broadcast %16 : vector<1x128xf32> to vector<2x128xf32>
    %19 = arith.addf %17, %18 : vector<2x128xf32>
    %cst_12 = arith.constant 0.000000e+00 : f32
    %20 = vector.broadcast %cst_12 : f32 to vector<2x128xf32>
    %21 = arith.maximumf %19, %20 : vector<2x128xf32>
    %c296 = arith.constant 296 : index
    %c0_13 = arith.constant 0 : index
    %22 = vector.load %arg1[%c296, %c0_13] : memref<432x128xf32, #tpu.memory_space<vmem>>, vector<128x128xf32>
    %c424 = arith.constant 424 : index
    %c0_14 = arith.constant 0 : index
    %23 = vector.load %arg1[%c424, %c0_14] : memref<432x128xf32, #tpu.memory_space<vmem>>, vector<1x128xf32>
    %cst_15 = arith.constant dense<0.000000e+00> : vector<2x128xf32>
    %24 = tpu.matmul %21, %22, %cst_15 {dimension_numbers = #tpu.dot_dimension_numbers<[1], [0], [0], [1], [0, 0, 1, 1], [], []>} : vector<2x128xf32>, vector<128x128xf32>, vector<2x128xf32> -> vector<2x128xf32>
    %25 = vector.broadcast %23 : vector<1x128xf32> to vector<2x128xf32>
    %26 = arith.addf %24, %25 : vector<2x128xf32>
    %c0_16 = arith.constant 0 : index
    %c0_17 = arith.constant 0 : index
    %27 = vector.load %arg2[%c0_16, %c0_17] : memref<2x128xf32, #tpu.memory_space<vmem>>, vector<2x128xf32>
    tpu.vector_store %arg2[%c0_16, %c0_17], %26 {strides = array<i32>} : memref<2x128xf32, #tpu.memory_space<vmem>>, vector<2x128xf32>,
    return
  }
}

</mosaic_0001>

<bundles_post_ra>
// kernel: ppo_forward.1
= control target key start
LH: loop header
LB: loop body
LE: loop exit
PB: predicated region body
PF: predicated region fallthrough
CT: control target
= control target key end

     0   :  { %7 = vsyncpa [#allocation3], 0  ;;  %s288_s0 = inlined_call_operand.hbm [shape: f32[2,12], index: 0, kind: input, shape index: {}]   ;;  %s289_s1 = inlined_call_operand.hbm [shape: f32[432,128], index: 1, kind: input, shape index: {}]   ;;  %s290_s2 = inlined_call_operand.vmem [shape: f32[2,128], index: 2, kind: output, shape index: {}]  }
   0x1   :  { %s14_s11 = sshll.u32 %s288_s0, 4  ;;  %s15_s11 = int_to_ptr.hbm [resolvable:$true] %s14_s11 }
   0x2   :  { %8 = vsyncpa [#allocation5], 0  ;;  %s260_s12 = smov [#allocation2]   ;;  %s24_s16 = sshll.u32 %s289_s1, 4  ;;  %s25_s16 = int_to_ptr.hbm [resolvable:$true] %s24_s16 }
   0x3   :  { %s16_s13 = sshll.u32 %s260_s12, 4  ;;  %s261_s17 = smov [#allocation4]   ;;  %s17_s13 = int_to_ptr.vmem [resolvable:$true] %s16_s13 }
   0x4   :  { %19 = dma.hbm_to_vmem [thread:$0]  %s15_s11, 32, %s17_s13, [#allocation3]  }
   0x5   :  { %s26_s18 = sshll.u32 %s261_s17, 4  ;;  %s262_s19 = smov 128   ;;  %s27_s18 = int_to_ptr.vmem [resolvable:$true] %s26_s18 }
   0x6   :  { %s263_s20 = smov 8  }
   0x7   :  { %32 = dma.hbm_to_vmem [thread:$0]  %s25_s16, 6912, %s27_s18, [#allocation5], %s262_s19, %s262_s19, %s263_s20  }
   0x8   :  { %256 = dma.done.wait [#allocation3], 32  }
   0x9   :  { %257 = vsyncadd [#allocation3], 4294967264 }
   0xa   :  { %258 = dma.done.wait [#allocation5], 6912  }
   0xb   :  { %259 = vsyncadd [#allocation5], 4294960384  ;;  %vm50_vm0 = vcmask 1043456   ;;  %v43_v0 = vld [vmem:[#allocation4 + $0x8] sm:$0xf]  ;;  %v42_v1 = vld [vmem:[#allocation4] sm:$0xff] }
   0xc   :  { %198 = vmatpush.msk.msra.mxu0 %vm50_vm0, %v43_v0  ;;  %v41_v2 = vld [vmem:[#allocation2] sm:$0x3]  ;;  %vm46_vm1 = vcmask 97280   ;;  %v90_v3 = vld [vmem:[#allocation4 + $0x90] sm:$0xff]  ;;  %v89_v4 = vld [vmem:[#allocation4 + $0x88] sm:$0xff] }
   0xd   :  { %93 = vmatpush.msra.mxu1 %v90_v3  ;;  %v88_v5 = vld [vmem:[#allocation4 + $0x80] sm:$0xff]  ;;  %v87_v6 = vld [vmem:[#allocation4 + $0x78] sm:$0xff]  ;;  %v86_v7 = vld [vmem:[#allocation4 + $0x70] sm:$0xff] }
   0xe   :  { %69 = vmatpush.msra.mxu0 %v42_v1  ;;  %v85_v8 = vld [vmem:[#allocation4 + $0x68] sm:$0xff]  ;;  %v84_v9 = vld [vmem:[#allocation4 + $0x60] sm:$0xff]  ;;  %v83_v10 = vld [vmem:[#allocation4 + $0x58] sm:$0xff] }
   0xf   :  { %199 = vmatmul.msk.f32.vlgmr.msra.gmra.mxu0 %vm46_vm1, %v41_v2  ;;  %94 = vmatpush.msra.mxu1 %v89_v4  ;;  %v82_v11 = vld [vmem:[#allocation4 + $0x50] sm:$0xff]  ;;  %v81_v12 = vld [vmem:[#allocation4 + $0x48] sm:$0xff]  ;;  %v80_v13 = vld [vmem:[#allocation4 + $0x40] sm:$0xff] }
  0x10   :  { %v79_v14 = vld [vmem:[#allocation4 + $0x38] sm:$0xff]  ;;  %v78_v15 = vld [vmem:[#allocation4 + $0x30] sm:$0xff]  ;;  %v77_v16 = vld [vmem:[#allocation4 + $0x28] sm:$0xff] }
  0x11   :  { %95 = vmatpush.msra.mxu1 %v88_v5  ;;  %v76_v17 = vld [vmem:[#allocation4 + $0x20] sm:$0xff]  ;;  %v75_v18 = vld [vmem:[#allocation4 + $0x18] sm:$0xff]  ;;  %v128_v20 = vld [vmem:[#allocation4 + $0x110] sm:$0xff] }
  0x12   :  { %v129_v19 = vld [vmem:[#allocation4 + $0x118] sm:$0xff]  ;;  %v127_v21 = vld [vmem:[#allocation4 + $0x108] sm:$0xff]  ;;  %v126_v22 = vld [vmem:[#allocation4 + $0x100] sm:$0xff] }
  0x13   :  { %96 = vmatpush.msra.mxu1 %v87_v6  ;;  %132 = vmatpush.msra.mxu2 %v129_v19  ;;  %v125_v23 = vld [vmem:[#allocation4 + $0xf8] sm:$0xff]  ;;  %v124_v24 = vld [vmem:[#allocation4 + $0xf0] sm:$0xff]  ;;  %v123_v25 = vld [vmem:[#allocation4 + $0xe8] sm:$0xff] }
  0x14   :  { %v122_v26 = vld [vmem:[#allocation4 + $0xe0] sm:$0xff]  ;;  %v121_v27 = vld [vmem:[#allocation4 + $0xd8] sm:$0xff]  ;;  %v120_v28 = vld [vmem:[#allocation4 + $0xd0] sm:$0xff] }
  0x15   :  { %97 = vmatpush.msra.mxu1 %v86_v7  ;;  %133 = vmatpush.msra.mxu2 %v128_v20  ;;  %v119_v29 = vld [vmem:[#allocation4 + $0xc8] sm:$0xff]  ;;  %v118_v30 = vld [vmem:[#allocation4 + $0xc0] sm:$0xff]  ;;  %v117_v31 = vld [vmem:[#allocation4 + $0xb8] sm:$0xff] }
  0x16   :  { %v204_v32 = vld [vmem:[#allocation4 + $0x10] ss:$0 sm:$0xff]  ;;  %v115_v37 = vld [vmem:[#allocation4 + $0xa8] sm:$0xff]  ;;  %v114_v38 = vld [vmem:[#allocation4 + $0xa0] sm:$0xff] }
  0x17   :  { %98 = vmatpush.msra.mxu1 %v85_v8  ;;  %134 = vmatpush.msra.mxu2 %v127_v21  ;;  %v116_v36 = vld [vmem:[#allocation4 + $0xb0] sm:$0xff]  ;;  %v168_v39 = vld [vmem:[#allocation4 + $0x1a0] sm:$0xff]  ;;  %v167_v40 = vld [vmem:[#allocation4 + $0x198] sm:$0xff] }
  0x18   :  { %171 = vmatpush.msra.mxu3 %v168_v39  ;;  %v166_v41 = vld [vmem:[#allocation4 + $0x190] sm:$0xff]  ;;  %v165_v42 = vld [vmem:[#allocation4 + $0x188] sm:$0xff]  ;;  %v164_v43 = vld [vmem:[#allocation4 + $0x180] sm:$0xff] }
  0x19   :  { %99 = vmatpush.msra.mxu1 %v84_v9  ;;  %135 = vmatpush.msra.mxu2 %v126_v22  ;;  %v163_v44 = vld [vmem:[#allocation4 + $0x178] sm:$0xff]  ;;  %v162_v45 = vld [vmem:[#allocation4 + $0x170] sm:$0xff]  ;;  %v161_v46 = vld [vmem:[#allocation4 + $0x168] sm:$0xff] }
  0x1a   :  { %172 = vmatpush.msra.mxu3 %v167_v40  ;;  %v160_v47 = vld [vmem:[#allocation4 + $0x160] sm:$0xff]  ;;  %v159_v48 = vld [vmem:[#allocation4 + $0x158] sm:$0xff]  ;;  %v158_v49 = vld [vmem:[#allocation4 + $0x150] sm:$0xff] }
  0x1b   :  { %100 = vmatpush.msra.mxu1 %v83_v10  ;;  %136 = vmatpush.msra.mxu2 %v125_v23  ;;  %v157_v50 = vld [vmem:[#allocation4 + $0x148] sm:$0xff]  ;;  %v156_v51 = vld [vmem:[#allocation4 + $0x140] sm:$0xff]  ;;  %v205_v52 = vld [vmem:[#allocation4 + $0x98] ss:$0 sm:$0xff] }
  0x1c   :  { %173 = vmatpush.msra.mxu3 %v166_v41  ;;  %v155_v56 = vld [vmem:[#allocation4 + $0x138] sm:$0xff]  ;;  %v154_v57 = vld [vmem:[#allocation4 + $0x130] sm:$0xff]  ;;  %v153_v58 = vld [vmem:[#allocation4 + $0x128] sm:$0xff] }
  0x1d   :  { %101 = vmatpush.msra.mxu1 %v82_v11  ;;  %137 = vmatpush.msra.mxu2 %v124_v24  ;;  %v206_v59 = vld [vmem:[#allocation4 + $0x120] ss:$0 sm:$0xff]  ;;  %v207_v63 = vld [vmem:[#allocation4 + $0x1a8] ss:$0 sm:$0xff] }
  0x1e   :  { %174 = vmatpush.msra.mxu3 %v165_v42 }
  0x1f   :  { %102 = vmatpush.msra.mxu1 %v81_v12  ;;  %138 = vmatpush.msra.mxu2 %v123_v25 }
  0x20   :  { %175 = vmatpush.msra.mxu3 %v164_v43 }
  0x21   :  { %103 = vmatpush.msra.mxu1 %v80_v13  ;;  %139 = vmatpush.msra.mxu2 %v122_v26 }
  0x22   :  { %176 = vmatpush.msra.mxu3 %v163_v44 }
  0x23   :  { %104 = vmatpush.msra.mxu1 %v79_v14  ;;  %140 = vmatpush.msra.mxu2 %v121_v27 }
  0x24   :  { %177 = vmatpush.msra.mxu3 %v162_v45 }
  0x25   :  { %105 = vmatpush.msra.mxu1 %v78_v15  ;;  %141 = vmatpush.msra.mxu2 %v120_v28 }
  0x26   :  { %178 = vmatpush.msra.mxu3 %v161_v46 }
  0x27   :  { %106 = vmatpush.msra.mxu1 %v77_v16  ;;  %142 = vmatpush.msra.mxu2 %v119_v29 }
  0x28   :  { %179 = vmatpush.msra.mxu3 %v160_v47 }
  0x29   :  { %107 = vmatpush.msra.mxu1 %v76_v17  ;;  %143 = vmatpush.msra.mxu2 %v118_v30 }
  0x2a   :  { %180 = vmatpush.msra.mxu3 %v159_v48 }
  0x2b   :  { %108 = vmatpush.msra.mxu1 %v75_v18  ;;  %144 = vmatpush.msra.mxu2 %v117_v31 }
  0x2c   :  { %181 = vmatpush.msra.mxu3 %v158_v49 }
  0x2d   :  { %145 = vmatpush.msra.mxu2 %v116_v36 }
  0x2e   :  { %182 = vmatpush.msra.mxu3 %v157_v50 }
  0x2f   :  { %146 = vmatpush.msra.mxu2 %v115_v37 }
  0x30   :  { %183 = vmatpush.msra.mxu3 %v156_v51 }
  0x31   :  { %147 = vmatpush.msra.mxu2 %v114_v38 }
  0x32   :  { %184 = vmatpush.msra.mxu3 %v155_v56 }
  0x34   :  { %185 = vmatpush.msra.mxu3 %v154_v57 }
  0x36   :  { %186 = vmatpush.msra.mxu3 %v153_v58 }
  0x8c   :  { %v71_v33 = vpop.f32.mrf.mxu0 }
  0x8d   :  { %v72_v34 = vadd.f32 %v204_v32, %v71_v33 }
  0x8f   :  { %v74_v35 = vmax.f32 %v72_v34, 0.0 }
  0x91   :  { %109 = vmatmul.f32.vlgmr.msra.gmra.mxu1 %v74_v35 }
 0x10e   :  { %v110_v53 = vpop.f32.mrf.mxu1 }
 0x10f   :  { %v111_v54 = vadd.f32 %v205_v52, %v110_v53 }
 0x111   :  { %v113_v55 = vmax.f32 %v111_v54, 0.0 }
 0x113   :  { %148 = vmatmul.f32.vlgmr.msra.gmra.mxu2 %v113_v55 }
 0x196   :  { %v149_v60 = vpop.f32.mrf.mxu2 }
 0x197   :  { %v150_v61 = vadd.f32 %v206_v59, %v149_v60 }
 0x199   :  { %v152_v62 = vmax.f32 %v150_v61, 0.0 }
 0x19b   :  { %187 = vmatmul.f32.vlgmr.msra.gmra.mxu3 %v152_v62 }
 0x21e   :  { %v188_v0 = vpop.f32.mrf.mxu3 }
 0x21f   :  { %v189_v1 = vadd.f32 %v207_v63, %v188_v0 }
 0x221   :  { %191 = vst [vmem:[%s290_s2] sm:$0x3] %v189_v1 }
 0x222   :  { %196 = vsyncpa [#allocation3], 1 }
 0x223   :  { %197 = vsyncpa [#allocation5], 1 }

</bundles_post_ra>
